<compile_context>
chip_gen: v7x
topology: tpu7x:2x2x1
jax: 0.10.0
libtpu: 0.0.40
codegen_flags: <defaults>
</compile_context>

<pallas_src>
import functools

import jax
import jax.numpy as jnp
import numpy as np
from jax import lax
from jax.experimental import pallas as pl
from jax.experimental.pallas import tpu as pltpu


def _choose_tm(hw, c, itemsize, budget_bytes=4 * 1024 * 1024):
    """Pick the tile width along H*W.

    Returns either:
      * hw itself (single tile; allowed since a full-extent block dim is legal
        regardless of lane alignment), or
      * a lane-aligned (multiple-of-128) width <= the per-tile VMEM budget,
        preferring an exact divisor of hw; if no divisor exists the caller
        handles the partial tail tile with masking.
    """
    sublanes = max(8, -(-c // 8) * 8)           # sublane padding of the tile
    cap = budget_bytes // (sublanes * itemsize)
    if hw <= cap:
        return hw                               # whole row in one tile
    cap = max(128, (cap // 128) * 128)
    t = cap
    while t >= 128:                             # largest lane-aligned divisor
        if hw % t == 0:
            return t
        t -= 128
    return cap                                  # no divisor: masked tail path


def _stats_kernel(hw, tm, needs_mask, x_ref, mean_ref, m2_ref):
    """Pass 1: per-image (over the H*W-tile axis) running mean / M2.

    x_ref is a (C, tm) tile.  Each tile is collapsed to (C, 1) tile-mean and
    centered tile-M2 (two XLU reduces + a couple of VPU ops), then Chan-merged
    into the resident (C, 1) output block for this image.  No full-width
    accumulator stores.
    """
    t = pl.program_id(1)
    x = x_ref[...].astype(jnp.float32)                          # (C, tm)

    if needs_mask:
        valid = jnp.minimum(jnp.int32(tm), jnp.int32(hw) - t * jnp.int32(tm))
        lane = lax.broadcasted_iota(jnp.int32, x.shape, dimension=1)
        mask = lane < valid
        cnt = valid.astype(jnp.float32)
        s = jnp.sum(jnp.where(mask, x, 0.0), axis=-1, keepdims=True)
        mean_t = s / cnt
        d = jnp.where(mask, x - mean_t, 0.0)
    else:
        cnt = jnp.float32(tm)
        s = jnp.sum(x, axis=-1, keepdims=True)
        mean_t = s * (1.0 / tm)
        d = x - mean_t
    m2_t = jnp.sum(d * d, axis=-1, keepdims=True)               # (C, 1)

    @pl.when(t == 0)
    def _init():
        mean_ref[...] = mean_t
        m2_ref[...] = m2_t

    @pl.when(t > 0)
    def _accumulate():
        cnt_old = (t * jnp.int32(tm)).astype(jnp.float32)
        tot = cnt_old + cnt
        delta = mean_t - mean_ref[...]
        mean_ref[...] = mean_ref[...] + delta * (cnt / tot)
        m2_ref[...] = m2_ref[...] + m2_t + delta * delta * (cnt_old * cnt / tot)


def _normalize_kernel(x_ref, inv_ref, shift_ref, y_ref):
    """Pass 2: elementwise y = x * inv_stdev + (-mean * inv_stdev)."""
    x = x_ref[...].astype(jnp.float32)                          # (C, tm)
    y_ref[...] = (x * inv_ref[...] + shift_ref[...]).astype(y_ref.dtype)


def running_mean_and_var(x, running_mean, running_var, running_count, *, tm=None):
    """Training-mode forward of RunningMeanAndVar.

    Args:
      x:             (N, C, H, W) float (NCHW, like PyTorch conv inputs).
      running_mean:  (1, C, 1, 1) float32 buffer.
      running_var:   (1, C, 1, 1) float32 buffer.
      running_count: ()           float32 buffer.

    Returns:
      (y, new_mean, new_var, new_count) matching the PyTorch module's output
      and updated buffers.
    """
    N, C, H, W = x.shape
    HW = H * W
    M = N * HW
    total = N * C * HW
    itemsize = jnp.dtype(x.dtype).itemsize

    if tm is None:
        tm = _choose_tm(HW, C, itemsize)
    tm = min(tm, HW)
    if tm != HW and tm % 128 != 0:
        raise ValueError("tm must be a multiple of 128 or equal to H*W")
    num_t = -(-HW // tm)
    needs_mask = (HW % tm) != 0

    # Free reshape only — x stays NCHW-contiguous in HBM, no transposes.
    x3 = x.reshape(N, C, HW)

    grid = (N, num_t)
    x_spec = pl.BlockSpec((None, C, tm), lambda n, t: (n, 0, t))
    stat_spec = pl.BlockSpec((None, C, 1), lambda n, t: (n, 0, 0))
    cvec_spec = pl.BlockSpec((C, 1), lambda n, t: (0, 0))

    # ---- Pass 1: per-image streaming stats (N parallel -> megacore on v7x,
    #      H*W-tile axis "arbitrary" = the reduction). ----
    mean_n, m2_n = pl.pallas_call(
        functools.partial(_stats_kernel, HW, tm, needs_mask),
        grid=grid,
        in_specs=[x_spec],
        out_specs=(stat_spec, stat_spec),
        out_shape=(
            jax.ShapeDtypeStruct((N, C, 1), jnp.float32),   # per-image mean
            jax.ShapeDtypeStruct((N, C, 1), jnp.float32),   # per-image M2
        ),
        compiler_params=pltpu.CompilerParams(
            dimension_semantics=("parallel", "arbitrary"),
            vmem_limit_bytes=32 * 1024 * 1024),
        cost_estimate=pl.CostEstimate(
            flops=4 * total, transcendentals=0,
            bytes_accessed=total * itemsize + 2 * N * C * 4),
    )(x3)

    # ---- Tiny O(N*C) merge in plain JAX: combine per-image stats, Chan-merge
    #      with the running buffers, rsqrt. ----
    mean_n = mean_n[..., 0]                                     # (N, C)
    m2_n = m2_n[..., 0]                                         # (N, C)
    batch_mean = jnp.mean(mean_n, axis=0)                       # (C,)
    batch_m2 = (jnp.sum(m2_n, axis=0)
                + jnp.float32(HW) * jnp.sum((mean_n - batch_mean[None, :]) ** 2,
                                            axis=0))
    batch_var = batch_m2 / jnp.float32(M)                       # (C,)

    n_new = jnp.float32(N)
    old_mean = running_mean.reshape(C).astype(jnp.float32)
    old_var = running_var.reshape(C).astype(jnp.float32)
    old_count = running_count.astype(jnp.float32)
    tot = old_count + n_new
    m2 = (old_var * old_count + batch_var * n_new
          + (batch_mean - old_mean) ** 2 * (old_count * n_new / tot))
    upd_var = m2 / tot
    upd_mean = (old_count * old_mean + n_new * batch_mean) / tot
    inv = lax.rsqrt(jnp.maximum(upd_var, jnp.float32(0.01)))
    shift = -upd_mean * inv                                     # addcmul bias

    # ---- Pass 2: elementwise normalize (fully parallel grid). ----
    y3 = pl.pallas_call(
        _normalize_kernel,
        grid=grid,
        in_specs=[x_spec, cvec_spec, cvec_spec],
        out_specs=x_spec,
        out_shape=jax.ShapeDtypeStruct((N, C, HW), x.dtype),
        compiler_params=pltpu.CompilerParams(
            dimension_semantics=("parallel", "parallel"),
            vmem_limit_bytes=32 * 1024 * 1024),
        cost_estimate=pl.CostEstimate(
            flops=2 * total, transcendentals=0,
            bytes_accessed=2 * total * itemsize),
    )(x3, inv.reshape(C, 1), shift.reshape(C, 1))

    y = y3.reshape(N, C, H, W)
    return (y,
            upd_mean.reshape(1, C, 1, 1),
            upd_var.reshape(1, C, 1, 1),
            jnp.reshape(tot, ()))


def _reference(x, running_mean, running_var, running_count):
    """Pure-JAX re-implementation of the PyTorch forward (training=True)."""
    N, C, H, W = x.shape
    xcf = jnp.transpose(x, (1, 0, 2, 3)).reshape(C, -1).astype(jnp.float32)
    new_mean = xcf.mean(-1, keepdims=True)
    new_count = jnp.float32(N)
    new_var = ((xcf - new_mean) ** 2).mean(-1, keepdims=True)
    new_mean = new_mean.reshape(1, C, 1, 1)
    new_var = new_var.reshape(1, C, 1, 1)
    m_a = running_var * running_count
    m_b = new_var * new_count
    m2 = m_a + m_b + ((new_mean - running_mean) ** 2
                      * running_count * new_count / (running_count + new_count))
    var = m2 / (running_count + new_count)
    mean = (running_count * running_mean + new_count * new_mean) / (
        running_count + new_count)
    count = running_count + new_count
    inv = lax.rsqrt(jnp.maximum(var, 0.01))
    y = (-mean * inv) + x * inv
    return y, mean, var, count


def _check(got, ref):
    for g, r in zip(got, ref):
        np.testing.assert_allclose(np.asarray(g), np.asarray(r),
                                   rtol=1e-4, atol=1e-4)


if __name__ == "__main__":
    key = jax.random.PRNGKey(0)
    N, C, H, W = 2, 4, 16, 16
    k1, k2, k3 = jax.random.split(key, 3)
    x = jax.random.normal(k1, (N, C, H, W), dtype=jnp.float32) * 2.0 + 0.5

    # Buffers initialized exactly like the module's __init__ (zeros).
    running_mean = jnp.zeros((1, C, 1, 1), dtype=jnp.float32)
    running_var = jnp.zeros((1, C, 1, 1), dtype=jnp.float32)
    running_count = jnp.zeros((), dtype=jnp.float32)

    # --- step 1 (fresh buffers) ---
    out1 = running_mean_and_var(x, running_mean, running_var, running_count)
    jax.block_until_ready(out1)
    _check(out1, _reference(x, running_mean, running_var, running_count))
    y, nm, nv, nc = out1

    # --- step 2 (non-trivial running buffers, exercises the Chan merge) ---
    x2 = jax.random.normal(k2, (N, C, H, W), dtype=jnp.float32) * 0.7 - 1.0
    out2 = running_mean_and_var(x2, nm, nv, nc)
    jax.block_until_ready(out2)
    _check(out2, _reference(x2, nm, nv, nc))

    # --- step 3: H*W with no lane-aligned divisor; force a 128-wide tile so
    #     the masked-tail path (partial last block) is exercised. ---
    H3 = W3 = 18                     # HW = 324 -> tiles of 128,128,68(masked)
    x3 = jax.random.normal(k3, (N, C, H3, W3), dtype=jnp.float32) * 3.0 + 10.0
    rm3 = jnp.zeros((1, C, 1, 1), dtype=jnp.float32)
    rv3 = jnp.zeros((1, C, 1, 1), dtype=jnp.float32)
    rc3 = jnp.zeros((), dtype=jnp.float32)
    out3 = running_mean_and_var(x3, rm3, rv3, rc3, tm=128)
    jax.block_until_ready(out3)
    _check(out3, _reference(x3, rm3, rv3, rc3))

    print("KERNEL_OK")
</pallas_src>

<mosaic_0001>
module attributes {stable_mosaic.version = 11 : i64} {
  func.func @_stats_kernel(%arg0: i32, %arg1: i32, %arg2: memref<1x4x256xf32, #tpu.memory_space<vmem>>, %arg3: memref<1x4x1xf32, #tpu.memory_space<vmem>>, %arg4: memref<1x4x1xf32, #tpu.memory_space<vmem>>) attributes {dimension_semantics = [#tpu.dimension_semantics<parallel>, #tpu.dimension_semantics<arbitrary>], iteration_bounds = array<i64: 2, 1>, scalar_prefetch = 0 : i64, scratch_operands = 0 : i64, tpu.core_type = #tpu.core_type<tc>, window_params = [{transform_indices = @transform_0, window_bounds = array<i64: 1, 4, 256>}, {transform_indices = @transform_1, window_bounds = array<i64: 1, 4, 1>}, {transform_indices = @transform_2, window_bounds = array<i64: 1, 4, 1>}]} {
    %c0 = arith.constant 0 : index
    %c0_0 = arith.constant 0 : index
    %c0_1 = arith.constant 0 : index
    %0 = vector.load %arg2[%c0, %c0_0, %c0_1] : memref<1x4x256xf32, #tpu.memory_space<vmem>>, vector<1x4x256xf32>
    %1 = vector.shape_cast %0 : vector<1x4x256xf32> to vector<4x256xf32>
    %cst = arith.constant dense<0.000000e+00> : vector<4xf32>
    %2 = vector.multi_reduction <add>, %1, %cst [1] : vector<4x256xf32> to vector<4xf32>
    %3 = vector.shape_cast %2 : vector<4xf32> to vector<4x1xf32>
    %cst_2 = arith.constant 3.906250e-03 : f32
    %4 = vector.broadcast %cst_2 : f32 to vector<4x1xf32>
    %5 = arith.mulf %3, %4 : vector<4x1xf32>
    %6 = vector.broadcast %5 : vector<4x1xf32> to vector<4x256xf32>
    %7 = arith.subf %1, %6 : vector<4x256xf32>
    %8 = arith.mulf %7, %7 : vector<4x256xf32>
    %cst_3 = arith.constant dense<0.000000e+00> : vector<4xf32>
    %9 = vector.multi_reduction <add>, %8, %cst_3 [1] : vector<4x256xf32> to vector<4xf32>
    %10 = vector.shape_cast %9 : vector<4xf32> to vector<4x1xf32>
    %c0_i32 = arith.constant 0 : i32
    %11 = arith.cmpi eq, %arg1, %c0_i32 : i32
    %12 = arith.extui %11 : i1 to i32
    %c0_i32_4 = arith.constant 0 : i32
    %13 = arith.cmpi ne, %12, %c0_i32_4 : i32
    scf.if %13 {
      %c0_8 = arith.constant 0 : index
      %c0_9 = arith.constant 0 : index
      %c0_10 = arith.constant 0 : index
      %17 = vector.load %arg3[%c0_8, %c0_9, %c0_10] : memref<1x4x1xf32, #tpu.memory_space<vmem>>, vector<1x4x1xf32>
      %18 = vector.shape_cast %17 : vector<1x4x1xf32> to vector<4x1xf32>
      %19 = vector.shape_cast %5 : vector<4x1xf32> to vector<1x4x1xf32>
      tpu.vector_store %arg3[%c0_8, %c0_9, %c0_10], %19 {strides = array<i32>} : memref<1x4x1xf32, #tpu.memory_space<vmem>>, vector<1x4x1xf32>,
      %c0_11 = arith.constant 0 : index
      %c0_12 = arith.constant 0 : index
      %c0_13 = arith.constant 0 : index
      %20 = vector.load %arg4[%c0_11, %c0_12, %c0_13] : memref<1x4x1xf32, #tpu.memory_space<vmem>>, vector<1x4x1xf32>
      %21 = vector.shape_cast %20 : vector<1x4x1xf32> to vector<4x1xf32>
      %22 = vector.shape_cast %10 : vector<4x1xf32> to vector<1x4x1xf32>
      tpu.vector_store %arg4[%c0_11, %c0_12, %c0_13], %22 {strides = array<i32>} : memref<1x4x1xf32, #tpu.memory_space<vmem>>, vector<1x4x1xf32>,
    } else {
    }
    %c0_i32_5 = arith.constant 0 : i32
    %14 = arith.cmpi sgt, %arg1, %c0_i32_5 : i32
    %15 = arith.extui %14 : i1 to i32
    %cst_6 = arith.constant 2.560000e+02 : f32
    %c0_i32_7 = arith.constant 0 : i32
    %16 = arith.cmpi ne, %15, %c0_i32_7 : i32
    scf.if %16 {
      %c256_i32 = arith.constant 256 : i32
      %17 = arith.muli %arg1, %c256_i32 : i32
      %18 = arith.sitofp %17 : i32 to f32
      %19 = arith.addf %18, %cst_6 : f32
      %c0_8 = arith.constant 0 : index
      %c0_9 = arith.constant 0 : index
      %c0_10 = arith.constant 0 : index
      %20 = vector.load %arg3[%c0_8, %c0_9, %c0_10] : memref<1x4x1xf32, #tpu.memory_space<vmem>>, vector<1x4x1xf32>
      %21 = vector.shape_cast %20 : vector<1x4x1xf32> to vector<4x1xf32>
      %22 = arith.subf %5, %21 : vector<4x1xf32>
      %c0_11 = arith.constant 0 : index
      %c0_12 = arith.constant 0 : index
      %c0_13 = arith.constant 0 : index
      %23 = vector.load %arg3[%c0_11, %c0_12, %c0_13] : memref<1x4x1xf32, #tpu.memory_space<vmem>>, vector<1x4x1xf32>
      %24 = vector.shape_cast %23 : vector<1x4x1xf32> to vector<4x1xf32>
      %25 = arith.divf %cst_6, %19 : f32
      %26 = vector.broadcast %25 : f32 to vector<4x1xf32>
      %27 = arith.mulf %22, %26 : vector<4x1xf32>
      %28 = arith.addf %24, %27 : vector<4x1xf32>
      %c0_14 = arith.constant 0 : index
      %c0_15 = arith.constant 0 : index
      %c0_16 = arith.constant 0 : index
      %29 = vector.load %arg3[%c0_14, %c0_15, %c0_16] : memref<1x4x1xf32, #tpu.memory_space<vmem>>, vector<1x4x1xf32>
      %30 = vector.shape_cast %29 : vector<1x4x1xf32> to vector<4x1xf32>
      %31 = vector.shape_cast %28 : vector<4x1xf32> to vector<1x4x1xf32>
      tpu.vector_store %arg3[%c0_14, %c0_15, %c0_16], %31 {strides = array<i32>} : memref<1x4x1xf32, #tpu.memory_space<vmem>>, vector<1x4x1xf32>,
      %c0_17 = arith.constant 0 : index
      %c0_18 = arith.constant 0 : index
      %c0_19 = arith.constant 0 : index
      %32 = vector.load %arg4[%c0_17, %c0_18, %c0_19] : memref<1x4x1xf32, #tpu.memory_space<vmem>>, vector<1x4x1xf32>
      %33 = vector.shape_cast %32 : vector<1x4x1xf32> to vector<4x1xf32>
      %34 = arith.addf %33, %10 : vector<4x1xf32>
      %35 = arith.mulf %22, %22 : vector<4x1xf32>
      %36 = arith.mulf %18, %cst_6 : f32
      %37 = arith.divf %36, %19 : f32
      %38 = vector.broadcast %37 : f32 to vector<4x1xf32>
      %39 = arith.mulf %35, %38 : vector<4x1xf32>
      %40 = arith.addf %34, %39 : vector<4x1xf32>
      %c0_20 = arith.constant 0 : index
      %c0_21 = arith.constant 0 : index
      %c0_22 = arith.constant 0 : index
      %41 = vector.load %arg4[%c0_20, %c0_21, %c0_22] : memref<1x4x1xf32, #tpu.memory_space<vmem>>, vector<1x4x1xf32>
      %42 = vector.shape_cast %41 : vector<1x4x1xf32> to vector<4x1xf32>
      %43 = vector.shape_cast %40 : vector<4x1xf32> to vector<1x4x1xf32>
      tpu.vector_store %arg4[%c0_20, %c0_21, %c0_22], %43 {strides = array<i32>} : memref<1x4x1xf32, #tpu.memory_space<vmem>>, vector<1x4x1xf32>,
    } else {
    }
    return
  }
  func.func @transform_0(%arg0: i32, %arg1: i32) -> (i32, i32, i32) {
    %c0_i32 = arith.constant 0 : i32
    %c0_i32_0 = arith.constant 0 : i32
    return %arg0, %c0_i32, %arg1 : i32, i32, i32
  }
  func.func @transform_1(%arg0: i32, %arg1: i32) -> (i32, i32, i32) {
    %c0_i32 = arith.constant 0 : i32
    %c0_i32_0 = arith.constant 0 : i32
    %c0_i32_1 = arith.constant 0 : i32
    return %arg0, %c0_i32, %c0_i32_0 : i32, i32, i32
  }
  func.func @transform_2(%arg0: i32, %arg1: i32) -> (i32, i32, i32) {
    %c0_i32 = arith.constant 0 : i32
    %c0_i32_0 = arith.constant 0 : i32
    %c0_i32_1 = arith.constant 0 : i32
    return %arg0, %c0_i32, %c0_i32_0 : i32, i32, i32
  }
}

</mosaic_0001>

<bundles_post_ra>
// kernel: tpu_custom_call.1
= control target key start
LH: loop header
LB: loop body
LE: loop exit
PB: predicated region body
PF: predicated region fallthrough
CT: control target
= control target key end

     0   :  { %8 = vsyncpa [#allocation3], 0  ;;  %s664_s0 = inlined_call_operand.hbm [shape: f32[2,4,256], index: 0, kind: input, shape index: {}]   ;;  %s665_s1 = inlined_call_operand.vmem [shape: f32[2,4,1], index: 1, kind: output, shape index: {0}]   ;;  %s666_s2 = inlined_call_operand.vmem [shape: f32[2,4,1], index: 2, kind: output, shape index: {1}]  }
   0x1   :  { %10 = vsyncpa [#allocation3 + $0x1], 0  ;;  %s532_s9 = smov 0   ;;  %s534_s10 = smov 0  }
   0x2   :  { %s536_s11 = smov 0   ;;  %s538_s12 = smov 0  }
   0x3   :  { %s540_s13 = smov 0   ;;  %s542_s14 = smov 0  }
   0x4 LB: > { %s362_s15 = sadd.s32 4294967295, %s513_s14   ;;  %s28_s16 = sadd.s32 1, %s509_s13  ;;  %s513_s14 = sphi %s542_s14, %s16_s14   ;;  %s509_s13 = sphi %s540_s13, %s676_s13   ;;  %s505_s12 = sphi %s538_s12, %s675_s12   ;;  %s501_s11 = sphi %s536_s11, %s674_s11   ;;  %s497_s10 = sphi %s534_s10, %s673_s10   ;;  %s493_s9 = sphi %s532_s9, %s672_s9  }
   0x5   : > { %p30_p0 = scmp.ge.s32.totalorder %s28_s16, 2  ;;  %s37_s17 = sadd.s32 1, %s501_s11 }
   0x6   : > { %p44_p1 = scmp.ne.s32.totalorder %s501_s11, %s497_s10  ;;  %p45_p2 = scmp.eq.s32.totalorder %s513_s14, 0 }
   0x7   : > { %s678_s16 = smov (%p30_p0, %s28_s16), 0  ;;  %p50_p4 = scmp.ne.s32.totalorder %s497_s10, %s493_s9 }
   0x8   : > { %p568_p3 = por %p45_p2, %p44_p1  ;;  %s32_s19 = ssub.s32 %s509_s13, %s678_s16 }
   0x9   : > { %p51_p5 = scmp.eq.s32.totalorder %s362_s15, 0  ;;  %p35_p6 = scmp.eq.s32.totalorder %s32_s19, 0 }
   0xa   : > { %p382_p8 = scmp.lt.s32.totalorder %s513_s14, 2  ;;  %s126_s22 = sand.u32 1, %s501_s11  }
   0xb   : > { %p575_p7 = por %p51_p5, %p50_p4  ;;  %s375_s23 = sshll.u32 %s509_s13, 7 }
   0xc   : > { %s581_s21 = scalar_select %p35_p6, %s501_s11, %s37_s17  }
   0xd   : > { %s366_s24 = sshll.u32 %s126_s22, 3  ;;  %s588_s27 = scalar_lea.hbm %s664_s0, %s375_s23 }
   0xe   : > { %s130_s28 = scalar_lea.vmem [#allocation2], %s366_s24  ;;  %p592_p9 = pnand %p382_p8, %p568_p3 }
   0xf   : > { %s140_s29 = sshll.u32 %s130_s28, 4  ;;  %s127_s3 = scalar_lea.sflag [#allocation3], %s126_s22  ;;  %s596_s29 = int_to_ptr.vmem [resolvable:$true] %s140_s29 }
  0x10   : > { %s433_s4 = scalar_lea.hbm %s588_s27, 128  ;;  %p435_p13 = pneg %p592_p9 }
  0x11   : > { %p434_p12 = scmp.ne.s32.totalorder %s588_s27, %s433_s4  ;;  %s438_s7 = scalar_lea.hbm %s664_s0, 256 }
  0x12   : > { %p439_p2 = scmp.lt.u32.totalorder %s588_s27, %s664_s0  ;;  %p440_p3 = scmp.lt.u32.totalorder %s438_s7, %s433_s4 }
  0x13   : > { %p436_p0 = pnand %p435_p13, %p434_p12  ;;  %p442_p5 = scmp.lt.u32.totalorder %s433_s4, %s588_s27 }
  0x14   : > { %p441_p4 = por %p440_p3, %p439_p2 }
  0x15   : > { %p437_p1 = pneg %p436_p0 }
  0x16   : > { %p443_p6 = por %p442_p5, %p441_p4 }
  0x18   : > { %p444_p8 = pnand %p443_p6, %p437_p1 }
  0x1a   : > { %447 = shalt.err (!%p444_p8)
}
  0x1b   : > { %s448_s15 = scalar_lea.vmem %s596_s29, 128  ;;  %s515_s17 = smov [#allocation2]  }
  0x1c   : > { %p449_p12 = scmp.ne.s32.totalorder %s596_s29, %s448_s15  ;;  %s453_s18 = sshll.u32 %s515_s17, 4  ;;  %s454_s18 = int_to_ptr.vmem [resolvable:$false] %s453_s18 }
  0x1d   : > { %s455_s19 = scalar_lea.vmem %s454_s18, 256  ;;  %p456_p11 = scmp.lt.s32.totalorder %s596_s29, %s454_s18 }
  0x1e   : > { %p451_p0 = pnand %p449_p12, %p435_p13  ;;  %p457_p2 = scmp.lt.s32.totalorder %s455_s19, %s448_s15 }
  0x20   : > { %p452_p10 = pneg %p451_p0  ;;  %p458_p3 = por %p457_p2, %p456_p11 }
  0x22   : > { %p459_p4 = pnand %p458_p3, %p452_p10 }
  0x24   : > { %462 = shalt.err (!%p459_p4)
}
  0x25   : > { %381 = dma.hbm_to_vmem [thread:$0]  (!%p592_p9), %s588_s27, 128, %s596_s29, %s127_s3  }
  0x26   : > { %p670_p1 = scmp.lt.s32.totalorder %s513_s14, 3  ;;  %p671_p5 = scmp.ge.s32.totalorder %s513_s14, 1 }
  0x28   : > { %p146_p13 = pnand %p671_p5, %p670_p1 }
  0x29   : > { %s151_s22 = sand.u32 (!%p146_p13), 1, %s497_s10  }
  0x2a   : > { %149 = sbr.rel (%p146_p13) target bundleno = 354 (0x162), region = 24  ;;  %s370_s23 = sshll.u32 (!%p146_p13), %s151_s22, 3 }
  0x2b   : > { %s152_s24 = scalar_lea.sflag (!%p146_p13), [#allocation3], %s151_s22  ;;  %s155_s25 = scalar_lea.vmem (!%p146_p13), [#allocation2], %s370_s23 }
  0x31   : > { %488 = dma.done.wait (%p575_p7), %s152_s24, 128  }
  0x32   : > { %490 = vsyncadd (%p575_p7), %s152_s24, 4294967168  ;;  %vm192_vm0 = vcmask 1043456   ;;  %v188_v0 = vld [vmem:[%s155_s25] sm:$0xff]  ;;  %p180_p9 = scmp.lt.s32.totalorder %s505_s12, 1  ;;  %v516_v5 = vmov 839922192   ;;  %v203_v7 = vlaneseq }
  0x33   : > { %v190_v1 = vcombine.high %v188_v0, %v188_v0  ;;  %v193_v2 = vsel %vm192_vm0, %v188_v0, 0.0  ;;  %v201_v6 = vunpack.c.l.s4 %v516_v5  ;;  %vm222_vm1 = vcmask 3072  }
  0x34   : > { %s680_s12 = smov (!%p180_p9, %s505_s12), 1  ;;  %v204_v9 = vshrl.u32 %v203_v7, 7 }
  0x35   : > { %v194_v3 = vsel %vm192_vm0, %v190_v1, 0.0  ;;  %v202_v8 = vunpack.c.0.s8 %v201_v6  ;;  %s371_s20 = sshll.u32 %s680_s12, 2 }
  0x36   : > { %v195_v4 = vadd.f32 %v194_v3, %v193_v2  ;;  %s183_s28 = scalar_lea.vmem %s665_s1, %s371_s20  ;;  %s187_s30 = scalar_lea.vmem %s666_s2, %s371_s20 }
  0x37   : > { %v205_v10 = vsub.s32 %v202_v8, %v204_v9 }
  0x38   : > { %196 = vadd.xlane.f32.xlu0 %v195_v4 }
  0xc5   : > { %v197_v11 = vpop.xlane.xlu0 %196 }
  0xc6   : > { %v198_v12 = vmul.f32 0.00390625, %v197_v11 }
  0xc8   : > { %v206_v13 = vrot.slane %v198_v12, %v205_v10  ;;  %223 = vst.msk [vmem:[%s183_s28] sm:$0xf] %vm222_vm1, %v198_v12 }
  0xca   : > { %v208_v14 = vsub.f32 %v188_v0, %v206_v13 }
  0xcc   : > { %v209_v15 = vmul.f32 %v208_v14, %v208_v14 }
  0xce   : > { %v211_v16 = vcombine.high %v209_v15, %v209_v15  ;;  %v213_v17 = vsel %vm192_vm0, %v209_v15, 0.0 }
  0xd0   : > { %v214_v18 = vsel %vm192_vm0, %v211_v16, 0.0 }
  0xd1   : > { %v215_v19 = vadd.f32 %v214_v18, %v213_v17 }
  0xd3   : > { %216 = vadd.xlane.f32.xlu0 %v215_v19 }
 0x160   : > { %v217_v20 = vpop.xlane.xlu0 %216 }
 0x161   : > { %224 = vst.msk [vmem:[%s187_s30] sm:$0xf] %vm222_vm1, %v217_v20 }
 0x162 PF: > { %s16_s14 = sadd.s32 1, %s513_s14   ;;  %s672_s9 = smov %s497_s10 }
 0x163   : > { %p13_p7 = scmp.ge.s32.totalorder %s16_s14, 4   ;;  %s673_s10 = smov %s501_s11 }
 0x164   : > { %s674_s11 = smov %s581_s21  ;;  %s675_s12 = smov %s509_s13 }
 0x165   : > { %s676_s13 = smov %s678_s16  ;;  %15 = sbr.rel (!%p13_p7) target bundleno = 4 (0x4), region = 84 }
 0x16c   :  { %288 = vsyncpa [#allocation3], 1 }
 0x16d   :  { %290 = vsyncpa [#allocation3 + $0x1], 1 }

</bundles_post_ra>
